<compile_context>
chip_gen: v7x
topology: tpu7x:2x2x1
jax: 0.10.0
libtpu: 0.0.40
codegen_flags: <defaults>
</compile_context>

<pallas_src>
import functools

import jax
import jax.numpy as jnp
from jax import lax
from jax.experimental import pallas as pl
from jax.experimental.pallas import tpu as pltpu


def _round_up(x: int, m: int) -> int:
    return ((x + m - 1) // m) * m


# Filler for "empty set" maxima: cosine similarities live in [-1, 1], so -4 is safely
# below every real value and avoids inf arithmetic inside the kernel.
_NEG_FILL = -4.0


def _triplet_loss_kernel(tgt_col_ref, emb_ref, tgt_row_ref, out_ref, *,
                         n_valid: int, n_pad: int, tile_n: int, margin: float):
    i = pl.program_id(0)
    start = pl.multiple_of(i * tile_n, tile_n)

    # Resident, pre-normalized bf16 table; row tile sliced in place (no second stream).
    ea = emb_ref[...]                                   # (n_pad, d_pad) bf16
    er = emb_ref[pl.ds(start, tile_n), :]               # (tile_n, d_pad) bf16

    # Cosine-similarity tile on the MXU: bf16 x bf16 -> f32.
    sim = lax.dot_general(er, ea, (((1,), (1,)), ((), ())),
                          preferred_element_type=jnp.float32)   # (tile_n, n_pad) f32

    tr = tgt_col_ref[...]                               # (tile_n, 1) int32
    ta = tgt_row_ref[...]                               # (1, n_pad) int32

    col_ids = lax.broadcasted_iota(jnp.int32, (1, n_pad), 1)
    row_ids = lax.broadcasted_iota(jnp.int32, (tile_n, 1), 0) + i * tile_n

    # Padded columns (sentinel target -1, zero embedding): push their sims to ~-4 with a
    # single broadcast add so they can never win the negative max nor pass the (>=0.5)
    # negative threshold. Positives already exclude them via the sentinel target.
    if n_valid < n_pad:
        sim = sim + jnp.where(col_ids < n_valid, jnp.float32(0.0), jnp.float32(_NEG_FILL))

    same = tr == ta                                     # (tile_n, n_pad) bool
    pos = same & (row_ids != col_ids)                   # same class, not the diagonal
    neg = ~same

    fill = jnp.float32(_NEG_FILL)

    # Negative branch: one masked array reused for both the max and the thresholded sum
    # (the -4 fill can never exceed max(0.6, max_pos) - margin >= 0.5).
    neg_vals = jnp.where(neg, sim, fill)
    max_neg = jnp.max(neg_vals, axis=-1, keepdims=True)

    # Positive branch.
    max_pos = jnp.max(jnp.where(pos, sim, fill), axis=-1, keepdims=True)
    has_pos = max_pos > jnp.float32(-2.0)               # any positive exists

    # positives with sim < max_neg + margin contribute (1 - sim); the +2 fill can never
    # satisfy "< max_neg + margin" (<= 1.1), so no extra & with pos is needed.
    pos_hi = jnp.where(pos, sim, jnp.float32(2.0))
    t1 = max_neg + jnp.float32(margin)
    pos_loss = jnp.sum(jnp.where(pos_hi < t1, 1.0 - pos_hi, 0.0), axis=-1, keepdims=True)

    # negatives with sim > max(0.6, max_pos) - margin contribute sim.
    t2 = jnp.maximum(jnp.float32(0.6), max_pos) - jnp.float32(margin)
    neg_loss = jnp.sum(jnp.where(neg_vals > t2, neg_vals, 0.0), axis=-1, keepdims=True)

    row_loss = jnp.where(has_pos, pos_loss + neg_loss, 0.0)
    if n_valid < n_pad:                                  # zero out padded rows
        row_loss = jnp.where(row_ids < n_valid, row_loss, 0.0)

    # Lane-dense per-tile partial-sum slab (no masked (1,1) stores, no cross-grid carry).
    out_ref[...] = jnp.full(out_ref.shape, jnp.sum(row_loss), dtype=jnp.float32)


def batchwise_triplet_loss(emb, target, margin: float = 0.1, tile_n: int | None = None):
    """Pallas-TPU forward of BatchWiseTripletLoss. emb: (N, D) float, target: (N,) int."""
    emb = jnp.asarray(emb, jnp.float32)
    target = jnp.asarray(target, jnp.int32)
    n, d = emb.shape

    # L2-normalize ONCE in the wrapper (== F.normalize(p=2, dim=-1), eps=1e-12), in f32.
    ssq = jnp.sum(emb * emb, axis=-1, keepdims=True)
    emb_n = emb * lax.rsqrt(jnp.maximum(ssq, jnp.float32(1e-24)))

    # Per-generation VMEM capacity (v7x: 64 MiB/TC; v5e/v6e: 128 MiB).
    try:
        vmem_cap = int(pltpu.get_tpu_info().vmem_capacity_bytes)
    except Exception:
        vmem_cap = 64 * 1024 * 1024            # conservative (v7x-sized) fallback
    small_vmem = vmem_cap <= 64 * 1024 * 1024

    d_pad = _round_up(d, 128)                  # lane-dense / MXU-aligned contraction dim

    if tile_n is None:
        cap = 256 if small_vmem else 512
        cands = [t for t in (128, 256, 512) if t <= cap]
        # Minimize padding waste; break ties toward the larger tile (fewer grid steps).
        tile_n = min(cands, key=lambda t: (_round_up(n, t), -t))

        def _fits(t):
            npad = _round_up(n, t)
            table = 2 * npad * d_pad * 2       # double-buffered bf16 resident table
            work = 6 * t * npad * 4            # f32 sim tile + mask/select temporaries
            return table + work <= int(0.6 * vmem_cap)

        while tile_n > 128 and not _fits(tile_n):
            tile_n //= 2
    else:
        tile_n = max(128, _round_up(tile_n, 128))

    n_pad = _round_up(n, tile_n)               # multiple of tile_n (itself 128-aligned)
    num_tiles = n_pad // tile_n

    # Pre-normalized bf16 table; padded rows are zero, padded targets are -1 (sentinel).
    emb_p = jnp.zeros((n_pad, d_pad), jnp.bfloat16).at[:n, :d].set(emb_n.astype(jnp.bfloat16))
    tgt_col = jnp.full((n_pad, 1), -1, jnp.int32).at[:n, 0].set(target)
    tgt_row = tgt_col.reshape(1, n_pad)

    kernel = functools.partial(_triplet_loss_kernel, n_valid=n, n_pad=n_pad,
                               tile_n=tile_n, margin=float(margin))

    # Rough resident-VMEM estimate; only raise the scoped limit when needed, and keep
    # ~25% physical headroom (48 MiB on 64 MiB parts, ~100 MiB on 128 MiB parts).
    est = 2 * n_pad * d_pad * 2 + 6 * tile_n * n_pad * 4 + 8 * n_pad
    cp = dict(dimension_semantics=("parallel",))
    if est > 16 * 1024 * 1024:
        ceiling = 48 * 1024 * 1024 if small_vmem else 100 * 1024 * 1024
        cp["vmem_limit_bytes"] = int(min(max(int(1.5 * est), 16 * 1024 * 1024), ceiling))

    partials = pl.pallas_call(
        kernel,
        out_shape=jax.ShapeDtypeStruct((num_tiles, 8, 128), jnp.float32),
        grid=(num_tiles,),
        in_specs=[
            pl.BlockSpec((tile_n, 1), lambda i: (i, 0)),     # per-tile row targets
            pl.BlockSpec((n_pad, d_pad), lambda i: (0, 0)),  # resident bf16 table (row tiles sliced in-kernel)
            pl.BlockSpec((1, n_pad), lambda i: (0, 0)),      # all targets as a lane row
        ],
        out_specs=pl.BlockSpec((1, 8, 128), lambda i: (i, 0, 0)),
        compiler_params=pltpu.CompilerParams(**cp),
    )(tgt_col, emb_p, tgt_row)

    return partials[:, 0, 0].sum() / jnp.float32(n)


def _reference_loss(emb, target, margin: float = 0.1):
    """Pure-JAX vectorization of the PyTorch module (mirrors the kernel's bf16 sim path)."""
    emb = jnp.asarray(emb, jnp.float32)
    ssq = jnp.sum(emb * emb, axis=-1, keepdims=True)
    emb = emb * lax.rsqrt(jnp.maximum(ssq, 1e-24))
    eb = emb.astype(jnp.bfloat16)
    sim = lax.dot_general(eb, eb, (((1,), (1,)), ((), ())),
                          preferred_element_type=jnp.float32)
    n = emb.shape[0]
    same = target[:, None] == target[None, :]
    eye = jnp.eye(n, dtype=bool)
    pos_mask = same & ~eye
    neg_mask = ~same
    fill = jnp.float32(_NEG_FILL)
    max_neg = jnp.max(jnp.where(neg_mask, sim, fill), axis=1, keepdims=True)
    max_pos = jnp.max(jnp.where(pos_mask, sim, fill), axis=1, keepdims=True)
    has_pos = max_pos > -2.0
    pos_sel = pos_mask & (sim < max_neg + margin)
    pos_loss = jnp.sum(jnp.where(pos_sel, 1.0 - sim, 0.0), axis=1, keepdims=True)
    neg_thr = jnp.maximum(0.6, max_pos) - margin
    neg_sel = neg_mask & (sim > neg_thr)
    neg_loss = jnp.sum(jnp.where(neg_sel, sim, 0.0), axis=1, keepdims=True)
    row = jnp.where(has_pos, pos_loss + neg_loss, 0.0)
    return jnp.sum(row) / n


if __name__ == "__main__":
    key = jax.random.PRNGKey(0)
    k1, k2, k3, k4 = jax.random.split(key, 4)

    # Case 1: small batch of 32-dim embeddings, 4 classes (single tile, padded D/cols).
    emb1 = jax.random.normal(k1, (16, 32), dtype=jnp.float32)
    tgt1 = jax.random.randint(k2, (16,), 0, 4, dtype=jnp.int32)
    loss1 = jax.block_until_ready(batchwise_triplet_loss(emb1, tgt1, margin=0.1))
    ref1 = jax.block_until_ready(_reference_loss(emb1, tgt1, margin=0.1))
    assert jnp.isfinite(loss1), loss1
    assert jnp.allclose(loss1, ref1, rtol=1e-4, atol=1e-4), (float(loss1), float(ref1))

    # Case 2: multi-tile path + ragged row/column padding (n=200, forced tile_n=128 -> 2 tiles).
    emb2 = jax.random.normal(k3, (200, 48), dtype=jnp.float32)
    tgt2 = jax.random.randint(k4, (200,), 0, 7, dtype=jnp.int32)
    loss2 = jax.block_until_ready(batchwise_triplet_loss(emb2, tgt2, margin=0.1, tile_n=128))
    ref2 = jax.block_until_ready(_reference_loss(emb2, tgt2, margin=0.1))
    assert jnp.isfinite(loss2), loss2
    assert jnp.allclose(loss2, ref2, rtol=1e-4, atol=1e-4), (float(loss2), float(ref2))

    print("KERNEL_OK")
</pallas_src>

<mosaic_0001>
module attributes {stable_mosaic.version = 11 : i64} {
  func.func @_triplet_loss_kernel(%arg0: i32, %arg1: memref<128x1xi32, #tpu.memory_space<vmem>>, %arg2: memref<128x128xbf16, #tpu.memory_space<vmem>>, %arg3: memref<1x128xi32, #tpu.memory_space<vmem>>, %arg4: memref<1x8x128xf32, #tpu.memory_space<vmem>>) attributes {dimension_semantics = [#tpu.dimension_semantics<parallel>], iteration_bounds = array<i64: 1>, scalar_prefetch = 0 : i64, scratch_operands = 0 : i64, tpu.core_type = #tpu.core_type<tc>, window_params = [{transform_indices = @transform_0, window_bounds = array<i64: 128, 1>}, {pipeline_mode = #tpu.pipeline_mode<synchronous>, transform_indices = @transform_1, window_bounds = array<i64: 128, 128>}, {pipeline_mode = #tpu.pipeline_mode<synchronous>, transform_indices = @transform_2, window_bounds = array<i64: 1, 128>}, {transform_indices = @transform_3, window_bounds = array<i64: 1, 8, 128>}]} {
    %c128_i32 = arith.constant 128 : i32
    %0 = arith.muli %arg0, %c128_i32 : i32
    %1 = tpu.assume_multiple %0, 128 : i32
    %c0 = arith.constant 0 : index
    %c0_0 = arith.constant 0 : index
    %2 = vector.load %arg2[%c0, %c0_0] : memref<128x128xbf16, #tpu.memory_space<vmem>>, vector<128x128xbf16>
    %3 = arith.index_cast %1 : i32 to index
    %c0_1 = arith.constant 0 : index
    %4 = vector.load %arg2[%3, %c0_1] : memref<128x128xbf16, #tpu.memory_space<vmem>>, vector<128x128xbf16>
    %cst = arith.constant dense<0.000000e+00> : vector<128x128xf32>
    %5 = tpu.matmul %4, %2, %cst {dimension_numbers = #tpu.dot_dimension_numbers<[1], [1], [0], [0], [0, 0, 1, 0], [], []>} : vector<128x128xbf16>, vector<128x128xbf16>, vector<128x128xf32> -> vector<128x128xf32>
    %c0_2 = arith.constant 0 : index
    %c0_3 = arith.constant 0 : index
    %6 = vector.load %arg1[%c0_2, %c0_3] : memref<128x1xi32, #tpu.memory_space<vmem>>, vector<128x1xi32>
    %c0_4 = arith.constant 0 : index
    %c0_5 = arith.constant 0 : index
    %7 = vector.load %arg3[%c0_4, %c0_5] : memref<1x128xi32, #tpu.memory_space<vmem>>, vector<1x128xi32>
    %8 = tpu.iota {dimensions = array<i32: 1>} : vector<1x128xi32>
    %9 = tpu.iota {dimensions = array<i32: 0>} : vector<128x1xi32>
    %c128_i32_6 = arith.constant 128 : i32
    %10 = arith.muli %arg0, %c128_i32_6 : i32
    %11 = vector.broadcast %10 : i32 to vector<128x1xi32>
    %12 = arith.addi %9, %11 : vector<128x1xi32>
    %c16_i32 = arith.constant 16 : i32
    %13 = vector.broadcast %c16_i32 : i32 to vector<1x128xi32>
    %14 = arith.cmpi slt, %8, %13 : vector<1x128xi32>
    %cst_7 = arith.constant 0.000000e+00 : f32
    %cst_8 = arith.constant -4.000000e+00 : f32
    %15 = vector.broadcast %cst_7 : f32 to vector<1x128xf32>
    %16 = vector.broadcast %cst_8 : f32 to vector<1x128xf32>
    %17 = arith.select %14, %15, %16 : vector<1x128xi1>, vector<1x128xf32>
    %18 = vector.broadcast %17 : vector<1x128xf32> to vector<128x128xf32>
    %19 = arith.addf %5, %18 : vector<128x128xf32>
    %20 = vector.broadcast %6 : vector<128x1xi32> to vector<128x128xi32>
    %21 = vector.broadcast %7 : vector<1x128xi32> to vector<128x128xi32>
    %22 = arith.cmpi eq, %20, %21 : vector<128x128xi32>
    %23 = vector.broadcast %12 : vector<128x1xi32> to vector<128x128xi32>
    %24 = vector.broadcast %8 : vector<1x128xi32> to vector<128x128xi32>
    %25 = arith.cmpi ne, %23, %24 : vector<128x128xi32>
    %26 = arith.andi %22, %25 : vector<128x128xi1>
    %cst_9 = arith.constant dense<true> : vector<128x128xi1>
    %27 = arith.xori %22, %cst_9 : vector<128x128xi1>
    %cst_10 = arith.constant -4.000000e+00 : f32
    %28 = vector.broadcast %cst_10 : f32 to vector<128x128xf32>
    %29 = arith.select %27, %19, %28 : vector<128x128xi1>, vector<128x128xf32>
    %cst_11 = arith.constant dense<0xFF800000> : vector<128xf32>
    %30 = vector.multi_reduction <maximumf>, %29, %cst_11 [1] : vector<128x128xf32> to vector<128xf32>
    %31 = vector.shape_cast %30 : vector<128xf32> to vector<128x1xf32>
    %cst_12 = arith.constant -4.000000e+00 : f32
    %32 = vector.broadcast %cst_12 : f32 to vector<128x128xf32>
    %33 = arith.select %26, %19, %32 : vector<128x128xi1>, vector<128x128xf32>
    %cst_13 = arith.constant dense<0xFF800000> : vector<128xf32>
    %34 = vector.multi_reduction <maximumf>, %33, %cst_13 [1] : vector<128x128xf32> to vector<128xf32>
    %35 = vector.shape_cast %34 : vector<128xf32> to vector<128x1xf32>
    %cst_14 = arith.constant -2.000000e+00 : f32
    %36 = vector.broadcast %cst_14 : f32 to vector<128x1xf32>
    %37 = arith.cmpf ogt, %35, %36 : vector<128x1xf32>
    %cst_15 = arith.constant 2.000000e+00 : f32
    %38 = vector.broadcast %cst_15 : f32 to vector<128x128xf32>
    %39 = arith.select %26, %19, %38 : vector<128x128xi1>, vector<128x128xf32>
    %cst_16 = arith.constant 1.000000e-01 : f32
    %40 = vector.broadcast %cst_16 : f32 to vector<128x1xf32>
    %41 = arith.addf %31, %40 : vector<128x1xf32>
    %42 = vector.broadcast %41 : vector<128x1xf32> to vector<128x128xf32>
    %43 = arith.cmpf olt, %39, %42 : vector<128x128xf32>
    %cst_17 = arith.constant 1.000000e+00 : f32
    %44 = vector.broadcast %cst_17 : f32 to vector<128x128xf32>
    %45 = arith.subf %44, %39 : vector<128x128xf32>
    %cst_18 = arith.constant 0.000000e+00 : f32
    %46 = vector.broadcast %cst_18 : f32 to vector<128x128xf32>
    %47 = arith.select %43, %45, %46 : vector<128x128xi1>, vector<128x128xf32>
    %cst_19 = arith.constant dense<0.000000e+00> : vector<128xf32>
    %48 = vector.multi_reduction <add>, %47, %cst_19 [1] : vector<128x128xf32> to vector<128xf32>
    %49 = vector.shape_cast %48 : vector<128xf32> to vector<128x1xf32>
    %cst_20 = arith.constant 6.000000e-01 : f32
    %50 = vector.broadcast %cst_20 : f32 to vector<128x1xf32>
    %51 = arith.maximumf %50, %35 : vector<128x1xf32>
    %cst_21 = arith.constant 1.000000e-01 : f32
    %52 = vector.broadcast %cst_21 : f32 to vector<128x1xf32>
    %53 = arith.subf %51, %52 : vector<128x1xf32>
    %54 = vector.broadcast %53 : vector<128x1xf32> to vector<128x128xf32>
    %55 = arith.cmpf ogt, %29, %54 : vector<128x128xf32>
    %cst_22 = arith.constant 0.000000e+00 : f32
    %56 = vector.broadcast %cst_22 : f32 to vector<128x128xf32>
    %57 = arith.select %55, %29, %56 : vector<128x128xi1>, vector<128x128xf32>
    %cst_23 = arith.constant dense<0.000000e+00> : vector<128xf32>
    %58 = vector.multi_reduction <add>, %57, %cst_23 [1] : vector<128x128xf32> to vector<128xf32>
    %59 = vector.shape_cast %58 : vector<128xf32> to vector<128x1xf32>
    %60 = arith.addf %49, %59 : vector<128x1xf32>
    %cst_24 = arith.constant 0.000000e+00 : f32
    %61 = vector.broadcast %cst_24 : f32 to vector<128x1xf32>
    %62 = arith.select %37, %60, %61 : vector<128x1xi1>, vector<128x1xf32>
    %c16_i32_25 = arith.constant 16 : i32
    %63 = vector.broadcast %c16_i32_25 : i32 to vector<128x1xi32>
    %64 = arith.cmpi slt, %12, %63 : vector<128x1xi32>
    %cst_26 = arith.constant 0.000000e+00 : f32
    %65 = vector.broadcast %cst_26 : f32 to vector<128x1xf32>
    %66 = arith.select %64, %62, %65 : vector<128x1xi1>, vector<128x1xf32>
    %67 = vector.shape_cast %66 : vector<128x1xf32> to vector<1x128x1xf32>
    %cst_27 = arith.constant dense<0.000000e+00> : vector<1xf32>
    %68 = vector.multi_reduction <add>, %67, %cst_27 [1, 2] : vector<1x128x1xf32> to vector<1xf32>
    %69 = vector.shape_cast %68 : vector<1xf32> to vector<1x1x1xf32>
    %70 = vector.extract %69[0, 0, 0] : f32 from vector<1x1x1xf32>
    %71 = vector.broadcast %70 : f32 to vector<1x8x128xf32>
    %c0_28 = arith.constant 0 : index
    %c0_29 = arith.constant 0 : index
    %c0_30 = arith.constant 0 : index
    %72 = vector.load %arg4[%c0_28, %c0_29, %c0_30] : memref<1x8x128xf32, #tpu.memory_space<vmem>>, vector<1x8x128xf32>
    tpu.vector_store %arg4[%c0_28, %c0_29, %c0_30], %71 {strides = array<i32>} : memref<1x8x128xf32, #tpu.memory_space<vmem>>, vector<1x8x128xf32>,
    return
  }
  func.func @transform_0(%arg0: i32) -> (i32, i32) {
    %c0_i32 = arith.constant 0 : i32
    %c0_i32_0 = arith.constant 0 : i32
    return %arg0, %c0_i32 : i32, i32
  }
  func.func @transform_1(%arg0: i32) -> (i32, i32) {
    %c0_i32 = arith.constant 0 : i32
    %c0_i32_0 = arith.constant 0 : i32
    %c0_i32_1 = arith.constant 0 : i32
    return %c0_i32, %c0_i32_0 : i32, i32
  }
  func.func @transform_2(%arg0: i32) -> (i32, i32) {
    %c0_i32 = arith.constant 0 : i32
    %c0_i32_0 = arith.constant 0 : i32
    %c0_i32_1 = arith.constant 0 : i32
    return %c0_i32, %c0_i32_0 : i32, i32
  }
  func.func @transform_3(%arg0: i32) -> (i32, i32, i32) {
    %c0_i32 = arith.constant 0 : i32
    %c0_i32_0 = arith.constant 0 : i32
    %c0_i32_1 = arith.constant 0 : i32
    return %arg0, %c0_i32, %c0_i32_0 : i32, i32, i32
  }
}

</mosaic_0001>

<bundles_post_ra>
// kernel: tpu_custom_call.1
= control target key start
LH: loop header
LB: loop body
LE: loop exit
PB: predicated region body
PF: predicated region fallthrough
CT: control target
= control target key end

     0   :  { %v1004_v2 = vmov 0   ;;  %s1101_s0 = inlined_call_operand.vmem [shape: s32[128,1], index: 0, kind: input, shape index: {}]   ;;  %s1102_s1 = inlined_call_operand.vmem [shape: bf16[128,128], index: 1, kind: input, shape index: {}]   ;;  %s1103_s2 = inlined_call_operand.vmem [shape: s32[1,128], index: 2, kind: input, shape index: {}]   ;;  %s1104_s3 = inlined_call_operand.hbm [shape: f32[1,8,128], index: 3, kind: output, shape index: {}]  }
   0x1   :  { %v964_v0 = vld [vmem:[%s1102_s1] sm:$0xff]   ;;  %v965_v1 = vld [vmem:[%s1102_s1 + $0x8] sm:$0xff]   ;;  %963 = vset.pattern.permute.xlu0 %v1004_v2  ;;  %v966_v3 = vld [vmem:[%s1102_s1 + $0x10] sm:$0xff]  }
   0x2   :  { %909 = vmatprep.subr.bf16.mxu0 %v964_v0  ;;  %941 = vmatprep.subr.bf16.mxu1 %v964_v0  ;;  %v972_v4 = vld [vmem:[%s1102_s1] sm:$0xff]   ;;  %v54_v6 = vld [vmem:[%s1101_s0 + $0x8] sm:$0xff] }
   0x3   :  { %910 = vmatpush3.bf16.xpose.msra.mxu0 %v964_v0  ;;  %949 = vmatpush3.bf16.xpose.msra.mxu1 %v964_v0  ;;  %v53_v5 = vld [vmem:[%s1101_s0] sm:$0xff] }
   0x4   :  { %911 = vmatprep.subr.bf16.mxu0 %v965_v1  ;;  %942 = vmatprep.subr.bf16.mxu1 %v965_v1 }
   0x5   :  { %925 = vmatprep.mubr.bf16.mxu0 %v972_v4  ;;  %302 = vperm.xlu0 %963, %v53_v5  }
   0x9   :  { %305 = vperm.xlu0 %963, %v54_v6  }
   0xb   :  { %912 = vmatpush3.bf16.xpose.msra.mxu0 %v965_v1  ;;  %950 = vmatpush3.bf16.xpose.msra.mxu1 %v965_v1 }
   0xc   :  { %913 = vmatprep.subr.bf16.mxu0 %v966_v3  ;;  %943 = vmatprep.subr.bf16.mxu1 %v966_v3 }
   0xd   :  { %8 = vsyncpa [#allocation3], 0  ;;  %v967_v7 = vld [vmem:[%s1102_s1 + $0x18] sm:$0xff]   ;;  %v968_v8 = vld [vmem:[%s1102_s1 + $0x20] sm:$0xff]   ;;  %v70_v13 = vlaneseq  ;;  %v1005_v20 = vmov -4.0   ;;  %vm1006_vm3 = vmmov 1  }
   0xe   :  { %v969_v9 = vld [vmem:[%s1102_s1 + $0x28] sm:$0xff]   ;;  %v970_v10 = vld [vmem:[%s1102_s1 + $0x30] sm:$0xff]   ;;  %v971_v11 = vld [vmem:[%s1102_s1 + $0x38] sm:$0xff]   ;;  %vm801_vm15 = vcmask 7168  }
   0xf   :  { %v973_v12 = vld [vmem:[%s1102_s1 + $0x8] sm:$0xff]   ;;  %v71_v14 = vand.u32 127, %v70_v13  ;;  %v876_v16 = vld [vmem:[%s1103_s2] ss:$0 sm:$0xff]  ;;  %v73_v17 = vshrl.u32 %v70_v13, 7  ;;  %v976_v52 = vld [vmem:[%s1102_s1 + $0x10] sm:$0xff]  }
  0x10   :  { %v974_v49 = vld [vmem:[%s1102_s1 + $0x20] sm:$0xff]   ;;  %v975_v50 = vld [vmem:[%s1102_s1 + $0x28] sm:$0xff]   ;;  %v977_v53 = vld [vmem:[%s1102_s1 + $0x30] sm:$0xff]  }
  0x11   :  { %vm106_vm0 = vcmp.lt.s32.totalorder %v71_v14, 16  ;;  %vm369_vm2 = vcmp.ne.s32.totalorder %v73_v17, %v71_v14  ;;  %v74_v18 = vadd.s32 8, %v73_v17  ;;  %933 = vmatprep.mubr.bf16.mxu1 %v974_v49  ;;  %v978_v54 = vld [vmem:[%s1102_s1 + $0x18] sm:$0xff]  }
  0x12   :  { %v107_v21 = vsel %vm106_vm0, 0.0, %v1005_v20  ;;  %v979_v55 = vld [vmem:[%s1102_s1 + $0x38] sm:$0xff]   ;;  %s1007_s1 = smov [#allocation2]  }
  0x13   :  { %914 = vmatpush3.bf16.xpose.msra.mxu0 %v966_v3  ;;  %951 = vmatpush3.bf16.xpose.msra.mxu1 %v966_v3  ;;  %vm370_vm7 = vcmp.ne.s32.totalorder %v74_v18, %v71_v14  ;;  %s850_s21 = sshll.u32 %s1007_s1, 4  ;;  %s851_s21 = int_to_ptr.vmem [resolvable:$true] %s850_s21 }
  0x14   :  { %915 = vmatprep.subr.bf16.mxu0 %v967_v7  ;;  %944 = vmatprep.subr.bf16.mxu1 %v967_v7  ;;  %s980_s23 = scalar_lea.vmem %s851_s21, 128  ;;  %p985_p1 = scmp.lt.s32.totalorder %s851_s21, %s851_s21 }
  0x15   :  { %p981_p0 = scmp.ne.s32.totalorder %s851_s21, %s980_s23  ;;  %p986_p2 = scmp.lt.s32.totalorder %s980_s23, %s980_s23 }
  0x17   :  { %p987_p3 = por %p986_p2, %p985_p1 }
  0x19   :  { %p988_p4 = pnand %p987_p3, %p981_p0 }
  0x1b   :  { %916 = vmatpush3.bf16.xpose.msra.mxu0 %v967_v7  ;;  %952 = vmatpush3.bf16.xpose.msra.mxu1 %v967_v7 }
  0x1c   :  { %917 = vmatprep.subr.bf16.mxu0 %v968_v8  ;;  %945 = vmatprep.subr.bf16.mxu1 %v968_v8 }
  0x23   :  { %918 = vmatpush3.bf16.xpose.msra.mxu0 %v968_v8  ;;  %953 = vmatpush3.bf16.xpose.msra.mxu1 %v968_v8 }
  0x24   :  { %919 = vmatprep.subr.bf16.mxu0 %v969_v9  ;;  %946 = vmatprep.subr.bf16.mxu1 %v969_v9 }
  0x2b   :  { %920 = vmatpush3.bf16.xpose.msra.mxu0 %v969_v9  ;;  %954 = vmatpush3.bf16.xpose.msra.mxu1 %v969_v9 }
  0x2c   :  { %921 = vmatprep.subr.bf16.mxu0 %v970_v10  ;;  %947 = vmatprep.subr.bf16.mxu1 %v970_v10 }
  0x33   :  { %922 = vmatpush3.bf16.xpose.msra.mxu0 %v970_v10  ;;  %955 = vmatpush3.bf16.xpose.msra.mxu1 %v970_v10 }
  0x34   :  { %923 = vmatprep.subr.bf16.mxu0 %v971_v11  ;;  %948 = vmatprep.subr.bf16.mxu1 %v971_v11 }
  0x3b   :  { %924 = vmatpush3.bf16.xpose.msra.mxu0 %v971_v11  ;;  %956 = vmatpush3.bf16.xpose.msra.mxu1 %v971_v11 }
  0x42   :  { %926 = vmatmul.mubr.bf16.vlgmr.msra.gmra.mrb[0].mxu0 %v973_v12  ;;  %934 = vmatmul.mubr.bf16.vlgmr.msra.gmra.mrb[0].mxu1 %v975_v50 }
  0x43   :  { %929 = vmatprep.mubr.bf16.mxu0 %v976_v52  ;;  %937 = vmatprep.mubr.bf16.mxu1 %v977_v53 }
  0x4a   :  { %930 = vmatmul.mubr.bf16.gmra.mrb[4].mxu0 %v978_v54  ;;  %938 = vmatmul.mubr.bf16.gmra.mrb[4].mxu1 %v979_v55 }
  0x84   :  { %v303_v15 = vpop.permute.xlu0 %302 }
  0x85   :  { %vm353_vm1 = vcmp.eq.s32.totalorder %v303_v15, %v876_v16 }
  0x86   :  { %vm401_vm4 = vmxor %vm353_vm1, %vm1006_vm3 }
  0x87   :  { %vm385_vm5 = vmand %vm353_vm1, %vm369_vm2 }
  0x88   :  { %v306_v19 = vpop.permute.xlu0 %305 }
  0x89   :  { %vm354_vm6 = vcmp.eq.s32.totalorder %v306_v19, %v876_v16 }
  0x8a   :  { %vm386_vm8 = vmand %vm354_vm6, %vm370_vm7 }
  0x8b   :  { %vm402_vm9 = vmxor %vm354_vm6, %vm1006_vm3 }
 0x115   :  { %v927_v22 = vpop.f32.mrb[0].mxu0  ;;  %v935_v3 = vpop.f32.mrb[0].mxu1 }
 0x116   :  { %v238_v23 = vpop.f32.mrb[1].mxu0  ;;  %v270_v4 = vpop.f32.mrb[1].mxu1 }
 0x117   :  { %v239_v24 = vadd.f32 %v238_v23, %v107_v21  ;;  %v928_v25 = vpop.f32.mrb[2].mxu0  ;;  %v936_v5 = vpop.f32.mrb[2].mxu1 }
 0x118   :  { %v241_v26 = vpop.f32.mrb[3].mxu0  ;;  %v273_v6 = vpop.f32.mrb[3].mxu1 }
 0x119   :  { %v242_v27 = vadd.f32 %v241_v26, %v107_v21  ;;  %v465_v28 = vsel %vm385_vm5, %v239_v24, -4.0  ;;  %v529_v29 = vsel %vm385_vm5, %v239_v24, 2.0  ;;  %v417_v30 = vsel %vm401_vm4, %v239_v24, -4.0 }
 0x11a   :  { %481 = vmax.xlane.f32.xlu1 %v465_v28  ;;  %433 = vmax.xlane.f32.xlu0 %v417_v30  ;;  %v577_v37 = vsub.f32 1.0, %v529_v29 }
 0x11b   :  { %v530_v31 = vsel %vm386_vm8, %v242_v27, 2.0  ;;  %v466_v32 = vsel %vm386_vm8, %v242_v27, -4.0  ;;  %v418_v33 = vsel %vm402_vm9, %v242_v27, -4.0 }
 0x11c   :  { %v578_v45 = vsub.f32 1.0, %v530_v31 }
 0x11d   :  { %v931_v7 = vpop.f32.mrb[4].mxu0  ;;  %v939_v8 = vpop.f32.mrb[4].mxu1 }
 0x11e   :  { %483 = vmax.xlane.f32.xlu1 %v466_v32  ;;  %v254_v9 = vpop.f32.mrb[5].mxu0  ;;  %v286_v10 = vpop.f32.mrb[5].mxu1 }
 0x11f   :  { %v932_v11 = vpop.f32.mrb[6].mxu0  ;;  %v940_v12 = vpop.f32.mrb[6].mxu1 }
 0x120   :  { %v257_v13 = vpop.f32.mrb[7].mxu0  ;;  %v289_v14 = vpop.f32.mrb[7].mxu1 }
 0x122   :  { %435 = vmax.xlane.f32.xlu1 %v418_v33 }
 0x1a7   :  { %v482_v34 = vpop.xlane.xlu1 %481  ;;  %v434_v35 = vpop.xlane.xlu0 %433 }
 0x1a8   :  { %v545_v36 = vadd.f32 0.1, %v434_v35  ;;  %v641_v40 = vmax.f32 %v482_v34, 0.6  ;;  %vm513_vm14 = vcmp.gt.f32.partialorder %v482_v34, -2.0 }
 0x1aa   :  { %vm561_vm10 = vcmp.lt.f32.partialorder %v529_v29, %v545_v36  ;;  %v877_v42 = vadd.f32 -0.1, %v641_v40 }
 0x1ab   :  { %v484_v38 = vpop.xlane.xlu1 %483  ;;  %v593_v39 = vsel %vm561_vm10, %v577_v37, 0.0 }
 0x1ac   :  { %609 = vadd.xlane.f32.xlu1 %v593_v39  ;;  %v642_v43 = vmax.f32 %v484_v38, 0.6  ;;  %vm673_vm12 = vcmp.gt.f32.partialorder %v417_v30, %v877_v42  ;;  %vm514_vm0 = vcmp.gt.f32.partialorder %v484_v38, -2.0 }
 0x1ad   :  { %v689_v48 = vsel %vm673_vm12, %v417_v30, 0.0 }
 0x1ae   :  { %v878_v47 = vadd.f32 -0.1, %v642_v43 }
 0x1af   :  { %v436_v41 = vpop.xlane.xlu1 %435 }
 0x1b0   :  { %v546_v44 = vadd.f32 0.1, %v436_v41  ;;  %vm674_vm13 = vcmp.gt.f32.partialorder %v418_v33, %v878_v47 }
 0x1b1   :  { %v690_v51 = vsel %vm674_vm13, %v418_v33, 0.0 }
 0x1b2   :  { %vm562_vm11 = vcmp.lt.f32.partialorder %v530_v31, %v546_v44 }
 0x1b3   :  { %v594_v46 = vsel %vm562_vm11, %v578_v45, 0.0 }
 0x1b4   :  { %611 = vadd.xlane.f32.xlu1 %v594_v46 }
 0x1b8   :  { %705 = vadd.xlane.f32.xlu1 %v689_v48 }
 0x1bc   :  { %707 = vadd.xlane.f32.xlu1 %v690_v51 }
 0x239   :  { %v610_v56 = vpop.xlane.xlu1 %609 }
 0x241   :  { %v612_v57 = vpop.xlane.xlu1 %611 }
 0x245   :  { %v706_v58 = vpop.xlane.xlu1 %705 }
 0x246   :  { %v737_v59 = vadd.f32 %v706_v58, %v610_v56 }
 0x248   :  { %v753_v61 = vsel %vm513_vm14, %v737_v59, 0.0 }
 0x249   :  { %v708_v60 = vpop.xlane.xlu1 %707  ;;  %v802_v0 = vsel %vm801_vm15, %v753_v61, 0.0 }
 0x24a   :  { %v738_v62 = vadd.f32 %v708_v60, %v612_v57 }
 0x24c   :  { %v754_v63 = vsel %vm514_vm0, %v738_v62, 0.0 }
 0x24d   :  { %v803_v1 = vsel %vm801_vm15, %v754_v63, 0.0 }
 0x24e   :  { %v804_v2 = vadd.f32 %v803_v1, %v802_v0 }
 0x250   :  { %833 = vadd.xlane.f32.xlu1 %v804_v2 }
 0x2dd   :  { %v834_v15 = vpop.xlane.xlu1 %833 }
 0x2de   :  { %v835_v16 = vrot.slane %v834_v15, 4 }
 0x2e0   :  { %v836_v17 = vadd.f32 %v835_v16, %v834_v15 }
 0x2e2   :  { %v837_v18 = vrot.slane %v836_v17, 2 }
 0x2e4   :  { %v838_v19 = vadd.f32 %v837_v18, %v836_v17 }
 0x2e6   :  { %v839_v20 = vrot.slane %v838_v19, 1 }
 0x2e8   :  { %v840_v21 = vadd.f32 %v839_v20, %v838_v19 }
 0x2ea   :  { %957 = vpush %v840_v21 }
 0x31b   :  { %s958_s22 = spop %957 }
 0x31c   :  { %v842_v22 = vstv %s958_s22 }
 0x31d   :  { %843 = vst [vmem:[#allocation2] sm:$0xff] %v842_v22 }
 0x31e   :  { %991 = shalt.err (!%p988_p4)
}
 0x31f   :  { %s992_s26 = scalar_lea.hbm %s1104_s3, 128 }
 0x320   :  { %p993_p5 = scmp.ne.s32.totalorder %s1104_s3, %s992_s26  ;;  %p996_p6 = scmp.lt.u32.totalorder %s992_s26, %s1104_s3 }
 0x322   :  { %p998_p7 = pnand %p996_p6, %p993_p5 }
 0x324   :  { %1001 = shalt.err (!%p998_p7)
}
 0x325   :  { %853 = dma.vmem_to_hbm [thread:$0]  %s851_s21, 128, %s1104_s3, [#allocation3]  }
 0x326   :  { %1002 = dma.done.wait [#allocation3], 128  }
 0x327   :  { %1003 = vsyncadd [#allocation3], 4294967168 }
 0x328   :  { %857 = vsyncpa [#allocation3], 1 }

</bundles_post_ra>
